<compile_context>
chip_gen: v6e
topology: v6e:2x2x1
jax: 0.10.0
libtpu: 0.0.40
codegen_flags: <defaults>
</compile_context>

<pallas_src>
import jax
import jax.numpy as jnp
from jax.experimental import pallas as pl
from jax.experimental.pallas import tpu as pltpu


def _round_up(n, m):
    return ((n + m - 1) // m) * m


def mlp_kernel(x_ref, w1_ref, b1_ref, w2_ref, b2_ref, w3_ref, b3_ref, o_ref):
    # Transposed layout: batch tile is the lane (last) dim of every operand.
    x = x_ref[...]                                                     # [F,  bt]
    h1 = jnp.dot(w1_ref[...], x, preferred_element_type=jnp.float32) + b1_ref[...]
    h1 = jnp.maximum(h1, 0.0)                                          # [H1, bt]
    h2 = jnp.dot(w2_ref[...], h1, preferred_element_type=jnp.float32) + b2_ref[...]
    h2 = jnp.maximum(h2, 0.0)                                          # [H2, bt]
    y = jnp.dot(w3_ref[...], h2, preferred_element_type=jnp.float32) + b3_ref[...]
    o_ref[...] = y.astype(o_ref.dtype)                                 # [OUT, bt] lane-dense


def mlp_forward(x, params, *, batch_tile=512):
    """x: [B, F] float32 (PyTorch nn.Linear convention).
    params: PyTorch-layout weights w* = [out, in], biases b* = [out, 1]."""
    B, F = x.shape
    w1, b1 = params["w1"], params["b1"]
    w2, b2 = params["w2"], params["b2"]
    w3, b3 = params["w3"], params["b3"]
    H1, H2, OUT = w1.shape[0], w2.shape[0], w3.shape[0]

    # Batch tile lives on the 128-lane axis: multiple of 128, as large as useful.
    bt = max(128, min(_round_up(batch_tile, 128), _round_up(B, 128)))
    B_pad = _round_up(B, bt)

    # [B, F] -> [F, B_pad]; zero-pad ragged batch (padded columns are discarded).
    x_t = jnp.zeros((F, B_pad), x.dtype).at[:, :B].set(x.T)

    grid = (B_pad // bt,)
    flops = 2 * B_pad * (F * H1 + H1 * H2 + H2 * OUT)
    bytes_accessed = 4 * (F * B_pad + OUT * B_pad
                          + H1 * F + H2 * H1 + OUT * H2 + H1 + H2 + OUT)

    out_t = pl.pallas_call(
        mlp_kernel,
        out_shape=jax.ShapeDtypeStruct((OUT, B_pad), x.dtype),
        grid_spec=pltpu.PrefetchScalarGridSpec(
            num_scalar_prefetch=0,
            grid=grid,
            in_specs=[
                pl.BlockSpec((F, bt), lambda i: (0, i)),     # x tile  [F, bt]
                pl.BlockSpec((H1, F), lambda i: (0, 0)),     # W1 (VMEM-resident)
                pl.BlockSpec((H1, 1), lambda i: (0, 0)),     # b1
                pl.BlockSpec((H2, H1), lambda i: (0, 0)),    # W2
                pl.BlockSpec((H2, 1), lambda i: (0, 0)),     # b2
                pl.BlockSpec((OUT, H2), lambda i: (0, 0)),   # W3
                pl.BlockSpec((OUT, 1), lambda i: (0, 0)),    # b3
            ],
            out_specs=pl.BlockSpec((OUT, bt), lambda i: (0, i)),
        ),
        compiler_params=pltpu.CompilerParams(
            dimension_semantics=("parallel",),
            vmem_limit_bytes=48 << 20,   # headroom on v7x (64 MiB), ample on v5e/v6e
        ),
        cost_estimate=pl.CostEstimate(
            flops=flops, transcendentals=0, bytes_accessed=bytes_accessed),
    )(x_t, w1, b1, w2, b2, w3, b3)

    return out_t.T[:B]                                                 # [B, OUT]


def init_params(key, first_layer_size):
    """Deterministic init mirroring PyTorch nn.Linear defaults
    (uniform +-1/sqrt(fan_in)); weights kept in PyTorch [out, in] layout."""
    dims = [(first_layer_size, 64), (64, 32), (32, 2)]
    params = {}
    for idx, (fan_in, fan_out) in enumerate(dims, start=1):
        key, kw, kb = jax.random.split(key, 3)
        bound = 1.0 / jnp.sqrt(float(fan_in))
        params[f"w{idx}"] = jax.random.uniform(
            kw, (fan_out, fan_in), jnp.float32, -bound, bound)
        params[f"b{idx}"] = jax.random.uniform(
            kb, (fan_out, 1), jnp.float32, -bound, bound)
    return params


def mlp_reference(x, params):
    h1 = jnp.maximum(x @ params["w1"].T + params["b1"].T, 0.0)
    h2 = jnp.maximum(h1 @ params["w2"].T + params["b2"].T, 0.0)
    return h2 @ params["w3"].T + params["b3"].T


if __name__ == "__main__":
    key = jax.random.PRNGKey(0)
    first_layer_size = 32

    k_params, k_x1, k_x2 = jax.random.split(key, 3)
    params = init_params(k_params, first_layer_size)

    # Small batch (single tile, exercises batch padding 8 -> 128).
    x_small = jax.random.normal(k_x1, (8, first_layer_size), jnp.float32)
    out_small = jax.block_until_ready(mlp_forward(x_small, params))
    ref_small = mlp_reference(x_small, params)
    assert out_small.shape == (8, 2)
    assert jnp.allclose(out_small, ref_small, atol=1e-5, rtol=1e-5)

    # Ragged batch with multiple grid steps (exercises the parallel grid axis).
    x_big = jax.random.normal(k_x2, (300, first_layer_size), jnp.float32)
    out_big = jax.block_until_ready(mlp_forward(x_big, params, batch_tile=128))
    ref_big = mlp_reference(x_big, params)
    assert out_big.shape == (300, 2)
    assert jnp.allclose(out_big, ref_big, atol=1e-5, rtol=1e-5)

    print("KERNEL_OK")
</pallas_src>

<mosaic_0001>
module attributes {stable_mosaic.version = 11 : i64} {
  func.func @mlp_kernel(%arg0: i32, %arg1: memref<32x128xf32, #tpu.memory_space<vmem>>, %arg2: memref<64x32xf32, #tpu.memory_space<vmem>>, %arg3: memref<64x1xf32, #tpu.memory_space<vmem>>, %arg4: memref<32x64xf32, #tpu.memory_space<vmem>>, %arg5: memref<32x1xf32, #tpu.memory_space<vmem>>, %arg6: memref<2x32xf32, #tpu.memory_space<vmem>>, %arg7: memref<2x1xf32, #tpu.memory_space<vmem>>, %arg8: memref<2x128xf32, #tpu.memory_space<vmem>>) attributes {dimension_semantics = [#tpu.dimension_semantics<parallel>], iteration_bounds = array<i64: 1>, scalar_prefetch = 0 : i64, scratch_operands = 0 : i64, tpu.core_type = #tpu.core_type<tc>, window_params = [{transform_indices = @transform_0, window_bounds = array<i64: 32, 128>}, {pipeline_mode = #tpu.pipeline_mode<synchronous>, transform_indices = @transform_1, window_bounds = array<i64: 64, 32>}, {pipeline_mode = #tpu.pipeline_mode<synchronous>, transform_indices = @transform_2, window_bounds = array<i64: 64, 1>}, {pipeline_mode = #tpu.pipeline_mode<synchronous>, transform_indices = @transform_3, window_bounds = array<i64: 32, 64>}, {pipeline_mode = #tpu.pipeline_mode<synchronous>, transform_indices = @transform_4, window_bounds = array<i64: 32, 1>}, {pipeline_mode = #tpu.pipeline_mode<synchronous>, transform_indices = @transform_5, window_bounds = array<i64: 2, 32>}, {pipeline_mode = #tpu.pipeline_mode<synchronous>, transform_indices = @transform_6, window_bounds = array<i64: 2, 1>}, {transform_indices = @transform_7, window_bounds = array<i64: 2, 128>}]} {
    %c0 = arith.constant 0 : index
    %c0_0 = arith.constant 0 : index
    %0 = vector.load %arg1[%c0, %c0_0] : memref<32x128xf32, #tpu.memory_space<vmem>>, vector<32x128xf32>
    %c0_1 = arith.constant 0 : index
    %c0_2 = arith.constant 0 : index
    %1 = vector.load %arg2[%c0_1, %c0_2] : memref<64x32xf32, #tpu.memory_space<vmem>>, vector<64x32xf32>
    %cst = arith.constant dense<0.000000e+00> : vector<64x128xf32>
    %2 = tpu.matmul %1, %0, %cst {dimension_numbers = #tpu.dot_dimension_numbers<[1], [0], [0], [1], [0, 0, 1, 1], [], []>} : vector<64x32xf32>, vector<32x128xf32>, vector<64x128xf32> -> vector<64x128xf32>
    %c0_3 = arith.constant 0 : index
    %c0_4 = arith.constant 0 : index
    %3 = vector.load %arg3[%c0_3, %c0_4] : memref<64x1xf32, #tpu.memory_space<vmem>>, vector<64x1xf32>
    %4 = vector.broadcast %3 : vector<64x1xf32> to vector<64x128xf32>
    %5 = arith.addf %2, %4 : vector<64x128xf32>
    %cst_5 = arith.constant 0.000000e+00 : f32
    %6 = vector.broadcast %cst_5 : f32 to vector<64x128xf32>
    %7 = arith.maximumf %5, %6 : vector<64x128xf32>
    %c0_6 = arith.constant 0 : index
    %c0_7 = arith.constant 0 : index
    %8 = vector.load %arg4[%c0_6, %c0_7] : memref<32x64xf32, #tpu.memory_space<vmem>>, vector<32x64xf32>
    %cst_8 = arith.constant dense<0.000000e+00> : vector<32x128xf32>
    %9 = tpu.matmul %8, %7, %cst_8 {dimension_numbers = #tpu.dot_dimension_numbers<[1], [0], [0], [1], [0, 0, 1, 1], [], []>} : vector<32x64xf32>, vector<64x128xf32>, vector<32x128xf32> -> vector<32x128xf32>
    %c0_9 = arith.constant 0 : index
    %c0_10 = arith.constant 0 : index
    %10 = vector.load %arg5[%c0_9, %c0_10] : memref<32x1xf32, #tpu.memory_space<vmem>>, vector<32x1xf32>
    %11 = vector.broadcast %10 : vector<32x1xf32> to vector<32x128xf32>
    %12 = arith.addf %9, %11 : vector<32x128xf32>
    %cst_11 = arith.constant 0.000000e+00 : f32
    %13 = vector.broadcast %cst_11 : f32 to vector<32x128xf32>
    %14 = arith.maximumf %12, %13 : vector<32x128xf32>
    %c0_12 = arith.constant 0 : index
    %c0_13 = arith.constant 0 : index
    %15 = vector.load %arg6[%c0_12, %c0_13] : memref<2x32xf32, #tpu.memory_space<vmem>>, vector<2x32xf32>
    %cst_14 = arith.constant dense<0.000000e+00> : vector<2x128xf32>
    %16 = tpu.matmul %15, %14, %cst_14 {dimension_numbers = #tpu.dot_dimension_numbers<[1], [0], [0], [1], [0, 0, 1, 1], [], []>} : vector<2x32xf32>, vector<32x128xf32>, vector<2x128xf32> -> vector<2x128xf32>
    %c0_15 = arith.constant 0 : index
    %c0_16 = arith.constant 0 : index
    %17 = vector.load %arg7[%c0_15, %c0_16] : memref<2x1xf32, #tpu.memory_space<vmem>>, vector<2x1xf32>
    %18 = vector.broadcast %17 : vector<2x1xf32> to vector<2x128xf32>
    %19 = arith.addf %16, %18 : vector<2x128xf32>
    %c0_17 = arith.constant 0 : index
    %c0_18 = arith.constant 0 : index
    %20 = vector.load %arg8[%c0_17, %c0_18] : memref<2x128xf32, #tpu.memory_space<vmem>>, vector<2x128xf32>
    tpu.vector_store %arg8[%c0_17, %c0_18], %19 {strides = array<i32>} : memref<2x128xf32, #tpu.memory_space<vmem>>, vector<2x128xf32>,
    return
  }
  func.func @transform_0(%arg0: i32) -> (i32, i32) {
    %c0_i32 = arith.constant 0 : i32
    %c0_i32_0 = arith.constant 0 : i32
    return %c0_i32, %arg0 : i32, i32
  }
  func.func @transform_1(%arg0: i32) -> (i32, i32) {
    %c0_i32 = arith.constant 0 : i32
    %c0_i32_0 = arith.constant 0 : i32
    %c0_i32_1 = arith.constant 0 : i32
    return %c0_i32, %c0_i32_0 : i32, i32
  }
  func.func @transform_2(%arg0: i32) -> (i32, i32) {
    %c0_i32 = arith.constant 0 : i32
    %c0_i32_0 = arith.constant 0 : i32
    %c0_i32_1 = arith.constant 0 : i32
    return %c0_i32, %c0_i32_0 : i32, i32
  }
  func.func @transform_3(%arg0: i32) -> (i32, i32) {
    %c0_i32 = arith.constant 0 : i32
    %c0_i32_0 = arith.constant 0 : i32
    %c0_i32_1 = arith.constant 0 : i32
    return %c0_i32, %c0_i32_0 : i32, i32
  }
  func.func @transform_4(%arg0: i32) -> (i32, i32) {
    %c0_i32 = arith.constant 0 : i32
    %c0_i32_0 = arith.constant 0 : i32
    %c0_i32_1 = arith.constant 0 : i32
    return %c0_i32, %c0_i32_0 : i32, i32
  }
  func.func @transform_5(%arg0: i32) -> (i32, i32) {
    %c0_i32 = arith.constant 0 : i32
    %c0_i32_0 = arith.constant 0 : i32
    %c0_i32_1 = arith.constant 0 : i32
    return %c0_i32, %c0_i32_0 : i32, i32
  }
  func.func @transform_6(%arg0: i32) -> (i32, i32) {
    %c0_i32 = arith.constant 0 : i32
    %c0_i32_0 = arith.constant 0 : i32
    %c0_i32_1 = arith.constant 0 : i32
    return %c0_i32, %c0_i32_0 : i32, i32
  }
  func.func @transform_7(%arg0: i32) -> (i32, i32) {
    %c0_i32 = arith.constant 0 : i32
    %c0_i32_0 = arith.constant 0 : i32
    return %c0_i32, %arg0 : i32, i32
  }
}

</mosaic_0001>

<bundles_post_ra>
// kernel: tpu_custom_call.1
= control target key start
LH: loop header
LB: loop body
LE: loop exit
PB: predicated region body
PF: predicated region fallthrough
CT: control target
= control target key end

     0   :  { %vm87_vm0 = vcmask 261120   ;;  %v573_v3 = vmov 0   ;;  %s723_s0 = inlined_call_operand.vmem [shape: f32[32,128], index: 0, kind: input, shape index: {}]   ;;  %s724_s1 = inlined_call_operand.vmem [shape: f32[64,32], index: 1, kind: input, shape index: {}]   ;;  %s725_s2 = inlined_call_operand.vmem [shape: f32[64,1], index: 2, kind: input, shape index: {}]   ;;  %s726_s3 = inlined_call_operand.vmem [shape: f32[32,64], index: 3, kind: input, shape index: {}]   ;;  %s727_s4 = inlined_call_operand.vmem [shape: f32[32,1], index: 4, kind: input, shape index: {}]   ;;  %s728_s5 = inlined_call_operand.vmem [shape: f32[2,32], index: 5, kind: input, shape index: {}]   ;;  %s729_s6 = inlined_call_operand.vmem [shape: f32[2,1], index: 6, kind: input, shape index: {}]   ;;  %s730_s7 = inlined_call_operand.hbm [shape: f32[2,128], index: 7, kind: output, shape index: {}]  }
   0x1   :  { %v30_v0 = vld [vmem:[%s723_s0 + $0x18] sm:$0xff]  ;;  %v29_v1 = vld [vmem:[%s723_s0 + $0x10] sm:$0xff]  ;;  %v31_v2 = vld [vmem:[%s724_s1] sm:$0xff]  ;;  %549 = vset.pattern.permute.xlu0 %v573_v3  ;;  %550 = vset.pattern.permute.xlu1 %v573_v3 }
   0x2   :  { %492 = vmatprep.subr.mxu0 %v30_v0  ;;  %v28_v4 = vld [vmem:[%s723_s0 + $0x8] sm:$0xff]  ;;  %500 = vmatprep.mubr.msk.f32.mxu0 %vm87_vm0, %v31_v2  ;;  %v27_v5 = vld [vmem:[%s723_s0] sm:$0xff]  ;;  %v46_v6 = vld [vmem:[%s725_s2 + $0x38] sm:$0xff] }
   0x3   :  { %493 = vmatpush3.msra.mxu0 %v30_v0  ;;  %v44_v7 = vld [vmem:[%s725_s2 + $0x28] sm:$0xff]  ;;  %84 = vperm.xlu0 %549, %v46_v6   ;;  %v45_v9 = vld [vmem:[%s725_s2 + $0x30] sm:$0xff]  ;;  %v43_v11 = vld [vmem:[%s725_s2 + $0x20] sm:$0xff] }
   0x4   :  { %494 = vmatprep.subr.mxu0 %v29_v1  ;;  %v32_v8 = vld [vmem:[%s724_s1 + $0x8] sm:$0xff]  ;;  %74 = vperm.xlu1 %550, %v44_v7   ;;  %v33_v10 = vld [vmem:[%s724_s1 + $0x10] sm:$0xff] }
   0x5   :  { %495 = vmatpush3.msra.mxu0 %v29_v1 }
   0x6   :  { %496 = vmatprep.subr.mxu0 %v28_v4 }
   0x7   :  { %497 = vmatpush3.msra.mxu0 %v28_v4 }
   0x8   :  { %498 = vmatprep.subr.mxu0 %v27_v5 }
   0x9   :  { %499 = vmatpush3.msra.mxu0 %v27_v5 }
   0xa   :  { %12 = vsyncpa [#allocation3], 0  ;;  %501 = vmatmul.mubr.msk.f32.vlgmr.msra.gmra.mxu0 %vm87_vm0, %v32_v8  ;;  %79 = vperm.xlu0 %549, %v45_v9   ;;  %v34_v12 = vld [vmem:[%s724_s1 + $0x18] sm:$0xff]  ;;  %v35_v14 = vld [vmem:[%s724_s1 + $0x20] sm:$0xff]  ;;  %vm253_vm1 = vcmask 523264   ;;  %v574_v62 = vmov 0.0  }
   0xb   :  { %503 = vmatprep.mubr.msk.f32.mxu0 %vm87_vm0, %v33_v10  ;;  %69 = vperm.xlu1 %550, %v43_v11   ;;  %v42_v13 = vld [vmem:[%s725_s2 + $0x18] sm:$0xff]  ;;  %v41_v15 = vld [vmem:[%s725_s2 + $0x10] sm:$0xff]  ;;  %v36_v16 = vld [vmem:[%s724_s1 + $0x28] sm:$0xff]  ;;  %vm575_vm2 = vmmov 0   ;;  %s576_s8 = smov [#allocation2]  }
   0xc   :  { %v40_v17 = vld [vmem:[%s725_s2 + $0x8] sm:$0xff]  ;;  %v37_v18 = vld [vmem:[%s724_s1 + $0x30] sm:$0xff]  ;;  %v39_v19 = vld [vmem:[%s725_s2] sm:$0xff]  ;;  %534 = vmatprep.subr.mxu0 %v574_v62  ;;  %s442_s9 = sshll.u32 %s576_s8, 4  ;;  %s443_s9 = int_to_ptr.vmem [resolvable:$true] %s442_s9 }
   0xd   :  { %v38_v20 = vld [vmem:[%s724_s1 + $0x38] sm:$0xff]  ;;  %v231_v22 = vld [vmem:[%s727_s4 + $0x10] sm:$0xff]  ;;  %v230_v23 = vld [vmem:[%s727_s4 + $0x8] sm:$0xff]  ;;  %s551_s10 = scalar_lea.vmem %s443_s9, 32  ;;  %p556_p1 = scmp.lt.s32.totalorder %s443_s9, %s443_s9 }
   0xe   :  { %504 = vmatmul.mubr.msk.f32.gmra.mxu0 %vm87_vm0, %v34_v12  ;;  %64 = vperm.xlu0 %549, %v42_v13   ;;  %v232_v21 = vld [vmem:[%s727_s4 + $0x18] sm:$0xff]  ;;  %v229_v24 = vld [vmem:[%s727_s4] sm:$0xff]  ;;  %v226_v59 = vld [vmem:[%s726_s3 + $0x8] sm:$0xff]  ;;  %p552_p0 = scmp.ne.s32.totalorder %s443_s9, %s551_s10  ;;  %p557_p2 = scmp.lt.s32.totalorder %s551_s10, %s551_s10 }
   0xf   :  { %506 = vmatprep.mubr.msk.f32.mxu0 %vm87_vm0, %v35_v14  ;;  %59 = vperm.xlu1 %550, %v41_v15   ;;  %v356_v25 = vld [vmem:[%s729_s6] sm:$0x3]  ;;  %v227_v60 = vld [vmem:[%s726_s3 + $0x10] sm:$0xff]  ;;  %v228_v61 = vld [vmem:[%s726_s3 + $0x18] sm:$0xff] }
  0x10   :  { %v225_v26 = vld [vmem:[%s726_s3] sm:$0xff]  ;;  %p558_p3 = por %p557_p2, %p556_p1 }
  0x11   :  { %528 = vmatprep.mubr.msk.f32.mxu1 %vm253_vm1, %v225_v26  ;;  %v355_v15 = vld [vmem:[%s728_s5] sm:$0x3] }
  0x12   :  { %507 = vmatmul.mubr.msk.f32.gmra.mxu0 %vm87_vm0, %v36_v16  ;;  %54 = vperm.xlu0 %549, %v40_v17   ;;  %p559_p4 = pnand %p558_p3, %p552_p0 }
  0x13   :  { %509 = vmatprep.mubr.msk.f32.mxu0 %vm87_vm0, %v37_v18  ;;  %49 = vperm.xlu1 %550, %v39_v19  }
  0x16   :  { %510 = vmatmul.mubr.msk.f32.gmra.mxu0 %vm87_vm0, %v38_v20  ;;  %250 = vperm.xlu0 %549, %v232_v21  }
  0x17   :  { %245 = vperm.xlu1 %550, %v231_v22   ;;  %542 = vmatprep.mubr.msk.f32.mxu0 %vm575_vm2, %v574_v62 }
  0x1a   :  { %240 = vperm.xlu0 %549, %v230_v23  }
  0x1b   :  { %235 = vperm.xlu1 %550, %v229_v24  }
  0x1e   :  { %359 = vperm.xlu0 %549, %v356_v25  }
  0x7e   :  { %v85_v29 = vpop.permute.xlu0 %84 }
  0x7f   :  { %v75_v30 = vpop.permute.xlu1 %74 }
  0x85   :  { %v80_v34 = vpop.permute.xlu0 %79 }
  0x86   :  { %v70_v35 = vpop.permute.xlu1 %69 }
  0x89   :  { %v65_v43 = vpop.permute.xlu0 %64 }
  0x8a   :  { %v60_v44 = vpop.permute.xlu1 %59 }
  0x8d   :  { %v55_v51 = vpop.permute.xlu0 %54 }
  0x8e   :  { %v50_v52 = vpop.permute.xlu1 %49 }
  0x91   :  { %v251_v63 = vpop.permute.xlu0 %250 }
  0x92   :  { %v246_v1 = vpop.permute.xlu1 %245 }
  0x95   :  { %v241_v5 = vpop.permute.xlu0 %240 }
  0x96   :  { %v236_v10 = vpop.permute.xlu1 %235 }
  0x99   :  { %v360_v16 = vpop.permute.xlu0 %359 }
  0xca   :  { %v502_v27 = vpop.f32.mrf.mxu0 }
  0xcb   :  { %v184_v53 = vadd.f32 %v502_v27, %v55_v51 }
  0xcc   :  { %v178_v28 = vpop.f32.mrf.mxu0 }
  0xcd   :  { %v179_v55 = vadd.f32 %v178_v28, %v50_v52  ;;  %v218_v57 = vmax.f32 %v184_v53, 0.0 }
  0xce   :  { %v505_v31 = vpop.f32.mrf.mxu0 }
  0xcf   :  { %v194_v47 = vadd.f32 %v505_v31, %v65_v43  ;;  %v217_v58 = vmax.f32 %v179_v55, 0.0 }
  0xd0   :  { %v188_v32 = vpop.f32.mrf.mxu0 }
  0xd1   :  { %v189_v49 = vadd.f32 %v188_v32, %v60_v44  ;;  %v220_v54 = vmax.f32 %v194_v47, 0.0 }
  0xd2   :  { %v508_v33 = vpop.f32.mrf.mxu0 }
  0xd3   :  { %v204_v40 = vadd.f32 %v508_v33, %v75_v30  ;;  %v219_v56 = vmax.f32 %v189_v49, 0.0 }
  0xd4   :  { %v198_v36 = vpop.f32.mrf.mxu0 }
  0xd5   :  { %v199_v45 = vadd.f32 %v198_v36, %v70_v35  ;;  %v222_v48 = vmax.f32 %v204_v40, 0.0 }
  0xd6   :  { %v511_v37 = vpop.f32.mrf.mxu0 }
  0xd7   :  { %v214_v38 = vadd.f32 %v511_v37, %v85_v29  ;;  %v221_v50 = vmax.f32 %v199_v45, 0.0 }
  0xd8   :  { %v208_v39 = vpop.f32.mrf.mxu0 }
  0xd9   :  { %v224_v41 = vmax.f32 %v214_v38, 0.0  ;;  %v209_v42 = vadd.f32 %v208_v39, %v80_v34 }
  0xdb   :  { %v223_v46 = vmax.f32 %v209_v42, 0.0  ;;  %512 = vmatprep.subr.mxu1 %v224_v41 }
  0xdc   :  { %513 = vmatpush3.msra.mxu1 %v224_v41 }
  0xdd   :  { %514 = vmatprep.subr.mxu1 %v223_v46 }
  0xde   :  { %515 = vmatpush3.msra.mxu1 %v223_v46 }
  0xdf   :  { %516 = vmatprep.subr.mxu1 %v222_v48 }
  0xe0   :  { %517 = vmatpush3.msra.mxu1 %v222_v48 }
  0xe1   :  { %518 = vmatprep.subr.mxu1 %v221_v50 }
  0xe2   :  { %519 = vmatpush3.msra.mxu1 %v221_v50 }
  0xe3   :  { %520 = vmatprep.subr.mxu1 %v220_v54 }
  0xe4   :  { %521 = vmatpush3.msra.mxu1 %v220_v54 }
  0xe5   :  { %522 = vmatprep.subr.mxu1 %v219_v56 }
  0xe6   :  { %523 = vmatpush3.msra.mxu1 %v219_v56 }
  0xe7   :  { %524 = vmatprep.subr.mxu1 %v218_v57 }
  0xe8   :  { %525 = vmatpush3.msra.mxu1 %v218_v57 }
  0xe9   :  { %526 = vmatprep.subr.mxu1 %v217_v58 }
  0xea   :  { %527 = vmatpush3.msra.mxu1 %v217_v58 }
  0xeb   :  { %529 = vmatmul.mubr.msk.f32.vlgmr.msra.gmra.mxu1 %vm253_vm1, %v226_v59 }
  0xec   :  { %531 = vmatprep.mubr.msk.f32.mxu1 %vm253_vm1, %v227_v60 }
  0xef   :  { %532 = vmatmul.mubr.msk.f32.gmra.mxu1 %vm253_vm1, %v228_v61 }
 0x1ab   :  { %v530_v0 = vpop.f32.mrf.mxu1 }
 0x1ac   :  { %v338_v7 = vadd.f32 %v530_v0, %v241_v5 }
 0x1ad   :  { %v332_v2 = vpop.f32.mrf.mxu1 }
 0x1ae   :  { %v333_v11 = vadd.f32 %v332_v2, %v236_v10  ;;  %v352_v13 = vmax.f32 %v338_v7, 0.0 }
 0x1af   :  { %v533_v3 = vpop.f32.mrf.mxu1 }
 0x1b0   :  { %v348_v4 = vadd.f32 %v533_v3, %v251_v63  ;;  %v351_v14 = vmax.f32 %v333_v11, 0.0 }
 0x1b1   :  { %v342_v6 = vpop.f32.mrf.mxu1 }
 0x1b2   :  { %v354_v8 = vmax.f32 %v348_v4, 0.0  ;;  %v343_v9 = vadd.f32 %v342_v6, %v246_v1 }
 0x1b4   :  { %v353_v12 = vmax.f32 %v343_v9, 0.0  ;;  %535 = vmatpush3.msra.mxu0 %v354_v8 }
 0x1b5   :  { %536 = vmatprep.subr.mxu0 %v574_v62 }
 0x1b6   :  { %537 = vmatpush3.msra.mxu0 %v353_v12 }
 0x1b7   :  { %538 = vmatprep.subr.mxu0 %v574_v62 }
 0x1b8   :  { %539 = vmatpush3.msra.mxu0 %v352_v13 }
 0x1b9   :  { %540 = vmatprep.subr.mxu0 %v574_v62 }
 0x1ba   :  { %541 = vmatpush3.msra.mxu0 %v351_v14 }
 0x1bb   :  { %543 = vmatmul.mubr.msk.f32.vlgmr.msra.gmra.mxu0 %vm87_vm0, %v355_v15 }
 0x27b   :  { %v431_v17 = vpop.f32.mrf.mxu0 }
 0x27c   :  { %v432_v18 = vadd.f32 %v431_v17, %v360_v16 }
 0x27d   :  { %v544_v19 = vpop.f32.mrf.mxu0 }
 0x27e   :  { %435 = vst [vmem:[#allocation2] sm:$0x3] %v432_v18 }
 0x27f   :  { %562 = shalt.err (!%p559_p4)
}
 0x280   :  { %445 = dma.vmem_to_hbm [thread:$0]  %s443_s9, 32, %s730_s7, [#allocation3]  }
 0x281   :  { %571 = dma.done.wait [#allocation3], 32  }
 0x282   :  { %572 = vsyncadd [#allocation3], 4294967264 }
 0x283   :  { %449 = vsyncpa [#allocation3], 1 }

</bundles_post_ra>
